<compile_context>
chip_gen: v6e
topology: v6e:2x2x1
jax: 0.10.0
libtpu: 0.0.40
codegen_flags: <defaults>
</compile_context>

<pallas_src>
import numpy as np
import jax
import jax.numpy as jnp
from jax.experimental import pallas as pl
from jax.experimental.pallas import tpu as pltpu


def _softplus2_kernel(w_ref, out_ref):
    """Stable softplus of lanes 0/1 of the raw annealing-weight row."""
    w = w_ref[:, :2]                                                  # (1, 2) f32
    # Numerically stable softplus: max(x, 0) + log1p(exp(-|x|))
    out_ref[...] = jnp.maximum(w, 0.0) + jnp.log1p(jnp.exp(-jnp.abs(w)))


def parameter_prediction_net_constant(x, anneal_weights):
    """Returns (beta, alpha), each of shape (batch_size,), dtype float32."""
    batch_size = x[0].shape[0]

    # Feed the whole parameter vector as one row (no wrapper-side slice HLO);
    # only lanes 0/1 are live, the rest ride along in the same vreg.
    w_row = anneal_weights.astype(jnp.float32).reshape(1, -1)

    sp2d = pl.pallas_call(
        _softplus2_kernel,
        out_shape=jax.ShapeDtypeStruct((1, 2), jnp.float32),
        in_specs=[pl.BlockSpec(memory_space=pltpu.MemorySpace.VMEM)],
        out_specs=pl.BlockSpec(memory_space=pltpu.MemorySpace.VMEM),
        cost_estimate=pl.CostEstimate(flops=8, transcendentals=4,
                                      bytes_accessed=16),
    )(w_row)

    # Batch expansion stays outside the kernel; XLA fuses this into the
    # consumer for free (an in-kernel broadcast would force a (B,)-sized,
    # possibly masked, HBM writeback).
    beta = jnp.broadcast_to(sp2d[0, 0], (batch_size,))
    alpha = jnp.broadcast_to(sp2d[0, 1], (batch_size,))
    return beta, alpha


if __name__ == "__main__":
    key = jax.random.PRNGKey(0)

    # Small shapes: batch=2, channels=4, spatial=16; weights_dim=(4, 4).
    batch, channels, spatial = 2, 4, 16
    weights_dim = (4, 4)
    n_weights = 2 + int(np.prod(weights_dim))

    # x is a list of tensors in the PyTorch forward; only x[0]'s batch is used.
    x0 = jax.random.normal(key, (batch, channels, spatial, spatial), jnp.float32)
    x = (x0,)

    # Case 1: match nn.Parameter(torch.zeros(...)) init exactly.
    anneal_weights = jnp.zeros((n_weights,), jnp.float32)
    # Case 2: nonzero weights to exercise the softplus math.
    key, sub = jax.random.split(key)
    anneal_weights_rand = jax.random.normal(sub, (n_weights,), jnp.float32) * 3.0

    for w in (anneal_weights, anneal_weights_rand):
        beta, alpha = parameter_prediction_net_constant(x, w)
        beta = jax.block_until_ready(beta)
        alpha = jax.block_until_ready(alpha)

        # Reference check against plain-JAX softplus + broadcast.
        ref_beta = jnp.broadcast_to(jax.nn.softplus(w[0]), (batch,))
        ref_alpha = jnp.broadcast_to(jax.nn.softplus(w[1]), (batch,))
        assert beta.shape == (batch,) and alpha.shape == (batch,)
        assert beta.dtype == jnp.float32 and alpha.dtype == jnp.float32
        np.testing.assert_allclose(np.asarray(beta), np.asarray(ref_beta),
                                   rtol=1e-6, atol=1e-6)
        np.testing.assert_allclose(np.asarray(alpha), np.asarray(ref_alpha),
                                   rtol=1e-6, atol=1e-6)

    print("KERNEL_OK")
</pallas_src>

<mosaic_0001>
module attributes {stable_mosaic.version = 11 : i64} {
  func.func @_softplus2_kernel(%arg0: memref<1x18xf32, #tpu.memory_space<vmem>>, %arg1: memref<1x2xf32, #tpu.memory_space<vmem>>) attributes {dimension_semantics = [], scalar_prefetch = 0 : i64, scratch_operands = 0 : i64, tpu.core_type = #tpu.core_type<tc>} {
    %c0 = arith.constant 0 : index
    %c0_0 = arith.constant 0 : index
    %0 = vector.load %arg0[%c0, %c0_0] : memref<1x18xf32, #tpu.memory_space<vmem>>, vector<1x2xf32>
    %cst = arith.constant 0.000000e+00 : f32
    %1 = vector.broadcast %cst : f32 to vector<1x2xf32>
    %2 = arith.maximumf %0, %1 : vector<1x2xf32>
    %3 = math.absf %0 : vector<1x2xf32>
    %cst_1 = arith.constant 0.000000e+00 : f32
    %4 = vector.broadcast %cst_1 : f32 to vector<1x2xf32>
    %5 = arith.subf %4, %3 : vector<1x2xf32>
    %6 = math.exp %5 : vector<1x2xf32>
    %7 = math.log1p %6 : vector<1x2xf32>
    %8 = arith.addf %2, %7 : vector<1x2xf32>
    %c0_2 = arith.constant 0 : index
    %c0_3 = arith.constant 0 : index
    %9 = vector.load %arg1[%c0_2, %c0_3] : memref<1x2xf32, #tpu.memory_space<vmem>>, vector<1x2xf32>
    tpu.vector_store %arg1[%c0_2, %c0_3], %8 {strides = array<i32>} : memref<1x2xf32, #tpu.memory_space<vmem>>, vector<1x2xf32>,
    return
  }
}

</mosaic_0001>

<bundles_post_ra>
// kernel: tpu_custom_call.1
= control target key start
LH: loop header
LB: loop body
LE: loop exit
PB: predicated region body
PF: predicated region fallthrough
CT: control target
= control target key end

     0   :  { %6 = vsyncpa [#allocation3], 0  ;;  %s122_s0 = inlined_call_operand.hbm [shape: f32[1,18], index: 0, kind: input, shape index: {}]   ;;  %s123_s1 = inlined_call_operand.hbm [shape: f32[1,2], index: 1, kind: output, shape index: {}]  }
   0x1   :  { %7 = vsyncpa [#allocation4], 0  ;;  %s104_s6 = smov [#allocation2]  }
   0x2   :  { %s14_s7 = sshll.u32 %s104_s6, 4  ;;  %s15_s7 = int_to_ptr.vmem [resolvable:$true] %s14_s7 }
   0x3   :  { %s68_s8 = scalar_lea.vmem %s15_s7, 16  ;;  %s72_s9 = scalar_lea.vmem %s15_s7, 32 }
   0x4   :  { %p69_p0 = scmp.ne.s32.totalorder %s15_s7, %s68_s8  ;;  %p73_p1 = scmp.lt.s32.totalorder %s15_s7, %s15_s7 }
   0x5   :  { %p74_p2 = scmp.lt.s32.totalorder %s72_s9, %s68_s8 }
   0x7   :  { %p75_p3 = por %p74_p2, %p73_p1 }
   0x9   :  { %p76_p4 = pnand %p75_p3, %p69_p0 }
   0xb   :  { %79 = shalt.err (!%p76_p4)
}
   0xc   :  { %17 = dma.hbm_to_vmem [thread:$0]  %s122_s0, 16, %s15_s7, [#allocation3]  }
   0xd   :  { %100 = dma.done.wait [#allocation3], 16  }
   0xe   :  { %101 = vsyncadd [#allocation3], 4294967280  ;;  %v21_v0 = vld [vmem:[#allocation2] sm:$0x1]  ;;  %s105_s12 = smov [#allocation5]   ;;  %vm37_vm1 = vcmask 8192  }
   0xf   :  { %v23_v1 = vand.u32 2147483647, %v21_v0  ;;  %v22_v11 = vmax.f32 %v21_v0, 0.0  ;;  %s45_s0 = sshll.u32 %s105_s12, 4  ;;  %s46_s0 = int_to_ptr.vmem [resolvable:$true] %s45_s0 }
  0x10   :  { %s80_s13 = scalar_lea.vmem %s46_s0, 16  ;;  %s84_s14 = scalar_lea.vmem %s46_s0, 32 }
  0x11   :  { %v24_v2 = vsub.f32 0.0, %v23_v1  ;;  %p81_p5 = scmp.ne.s32.totalorder %s46_s0, %s80_s13  ;;  %p85_p6 = scmp.lt.s32.totalorder %s46_s0, %s46_s0 }
  0x12   :  { %p86_p7 = scmp.lt.s32.totalorder %s84_s14, %s80_s13 }
  0x13   :  { %v25_v3 = vmul.f32 1.442695, %v24_v2 }
  0x14   :  { %p87_p8 = por %p86_p7, %p85_p6 }
  0x15   :  { %56 = vpow2.f32 %v25_v3 }
  0x16   :  { %p88_p9 = pnand %p87_p8, %p81_p5 }
  0x22   :  { %v57_v4 = vpop.eup %56 }
  0x23   :  { %v27_v5 = vadd.f32 1.0, %v57_v4  ;;  %v30_v6 = vmul.f32 -0.5, %v57_v4  ;;  %v33_v8 = vand.u32 2147483647, %v57_v4 }
  0x25   :  { %58 = vlog2.f32 %v27_v5  ;;  %v31_v7 = vadd.f32 1.0, %v30_v6  ;;  %vm34_vm0 = vcmp.lt.f32.partialorder %v33_v8, 0.0004427343 }
  0x27   :  { %v32_v9 = vmul.f32 %v57_v4, %v31_v7 }
  0x32   :  { %v59_v10 = vpop.eup %58 }
  0x33   :  { %v29_v12 = vmul.f32 0.6931472, %v59_v10 }
  0x35   :  { %v35_v13 = vsel %vm34_vm0, %v32_v9, %v29_v12 }
  0x36   :  { %v36_v14 = vadd.f32 %v35_v13, %v22_v11 }
  0x38   :  { %38 = vst.msk [vmem:[#allocation5] sm:$0x1] %vm37_vm1, %v36_v14 }
  0x39   :  { %91 = shalt.err (!%p88_p9)
}
  0x3a   :  { %48 = dma.vmem_to_hbm [thread:$0]  %s46_s0, 16, %s123_s1, [#allocation4]  }
  0x3b   :  { %102 = dma.done.wait [#allocation4], 16  }
  0x3c   :  { %103 = vsyncadd [#allocation4], 4294967280 }
  0x3d   :  { %52 = vsyncpa [#allocation3], 1 }
  0x3e   :  { %53 = vsyncpa [#allocation4], 1 }

</bundles_post_ra>
